<compile_context>
chip_gen: v5e
topology: v5e:2x2
jax: 0.10.0
libtpu: 0.0.40
codegen_flags: <defaults>
</compile_context>

<pallas_src>
import functools

import jax
import jax.numpy as jnp
from jax.experimental import pallas as pl
from jax.experimental.pallas import tpu as pltpu

LAMB = 0.003
EPS = 1e-12          # only used by the pure-JAX reference
KH = KW = 3          # discriminator conv kernel size


def _prior_loss_kernel(W, w_ref, p_ref, m_ref, x_ref, out_ref, pad_ref):
    """One batch element per grid step.

    w_ref  : VMEM f32[C, 9]            conv weights, column t = ky*3 + kx
    p_ref  : SMEM f32[2]               [bias, lamb / (N*1*H*W)]
    m_ref  : VMEM f32[2, H*W]          [mask killing dx=-1 at w==0,
                                        mask killing dx=+1 at w==W-1]
    x_ref  : VMEM    [C, H*W]          one image, spatial dims flattened into lanes
    out_ref: SMEM f32[1, 1]            accumulated prior loss (same block every step)
    pad_ref: VMEM f32[C, H*W + 2*(W+1)] scratch: lane-padded copy of the image
    """
    C, HW = x_ref.shape
    P = W + 1                       # halo width: covers all ky shifts with zeros
    step = pl.program_id(0)

    @pl.when(step == 0)
    def _init():
        out_ref[0, 0] = jnp.float32(0.0)

    # Build the zero halo once per tile, entirely in VMEM (replaces the
    # wrapper-side jnp.pad HBM pass of the previous version); cast in-kernel.
    x = x_ref[...].astype(jnp.float32)
    zeros_pad = jnp.zeros((C, P), dtype=jnp.float32)
    pad_ref[:, 0:P] = zeros_pad
    pad_ref[:, P + HW:] = zeros_pad
    pad_ref[:, P:P + HW] = x
    xv = pad_ref[...]                                    # (C, HW + 2P)

    wts = w_ref[...]                                     # (C, 9), resident
    bias = p_ref[0]
    scale = p_ref[1]

    # 3x3 conv, single output channel, lane-dense VPU MACs.
    # One independent accumulator per kx column; only the within-row wrap of
    # kx = +/-1 needs a mask (the ky/row halo is covered by the zero padding).
    col_sums = []
    for dx in (-1, 0, 1):
        acc = None
        for dy in (-1, 0, 1):
            t = (dy + 1) * KW + (dx + 1)
            off = dy * W + dx
            win = xv[:, P + off:P + off + HW]            # (C, HW) lane window
            term = wts[:, t:t + 1] * win                 # (C,1) bcast over lanes
            acc = term if acc is None else acc + term
        col_sums.append(jnp.sum(acc, axis=0, keepdims=True))   # (1, HW)

    m_left = m_ref[0:1, :]
    m_right = m_ref[1:2, :]
    z = col_sums[1] + m_left * col_sums[0] + m_right * col_sums[2] + bias

    # log(sigmoid(z)) = -softplus(-z), numerically stable, no eps needed.
    neg = -z
    mx = jnp.maximum(neg, 0.0)
    softplus_neg = mx + jnp.log(jnp.exp(neg - mx) + jnp.exp(-mx))
    out_ref[0, 0] += -jnp.sum(softplus_neg)              # per-tile f32 partial

    @pl.when(step == pl.num_programs(0) - 1)
    def _finalize():
        out_ref[0, 0] = out_ref[0, 0] * scale            # lamb * mean(...)


def prior_loss(x, conv_w, conv_b, lamb=LAMB):
    """x: [N, C, H, W] (NCHW, f32/bf16). conv_w: [1, C, 3, 3]. conv_b: [1]."""
    N, C, H, W = x.shape
    HW = H * W

    # Free reshape (merge of the two trailing dims): lanes become H*W-dense.
    x3 = x.reshape(N, C, HW)

    # Tiny parameter / mask tensors (constant-folded under jit).
    wts = conv_w.reshape(C, KH * KW).astype(jnp.float32)          # [c, ky*3+kx]
    params = jnp.stack([
        conv_b.reshape(()).astype(jnp.float32),
        jnp.asarray(lamb, jnp.float32) / (N * 1 * H * W),
    ])
    col = jnp.arange(HW, dtype=jnp.int32) % W
    masks = jnp.stack([
        (col != 0).astype(jnp.float32),                           # dx = -1
        (col != W - 1).astype(jnp.float32),                       # dx = +1
    ])

    kernel = functools.partial(_prior_loss_kernel, W)
    out = pl.pallas_call(
        kernel,
        out_shape=jax.ShapeDtypeStruct((1, 1), jnp.float32),
        grid=(N,),
        in_specs=[
            pl.BlockSpec((C, KH * KW), lambda i: (0, 0)),          # weights (resident)
            pl.BlockSpec(memory_space=pltpu.MemorySpace.SMEM),     # [bias, scale]
            pl.BlockSpec((2, HW), lambda i: (0, 0)),               # kx wrap masks (resident)
            pl.BlockSpec((None, C, HW), lambda i: (i, 0, 0)),      # one image per step
        ],
        out_specs=pl.BlockSpec((1, 1), lambda i: (0, 0),
                               memory_space=pltpu.MemorySpace.SMEM),
        scratch_shapes=[pltpu.VMEM((C, HW + 2 * (W + 1)), jnp.float32)],
        compiler_params=pltpu.CompilerParams(
            dimension_semantics=("arbitrary",)),                   # accumulating axis
    )(wts, params, masks, x3)
    return out[0, 0]


def _reference(x, conv_w, conv_b, lamb=LAMB):
    # pure-JAX reference of the same discriminator + PriorLoss math
    d = jax.lax.conv_general_dilated(
        x.astype(jnp.float32), conv_w.astype(jnp.float32),
        window_strides=(1, 1), padding="SAME",
        dimension_numbers=("NCHW", "OIHW", "NCHW"))
    d = jax.nn.sigmoid(d + conv_b.reshape(1, -1, 1, 1))
    return jnp.mean(lamb * jnp.log(d + EPS))


if __name__ == "__main__":
    key = jax.random.PRNGKey(0)
    kx, kw, kb = jax.random.split(key, 3)

    N, C, H, W = 2, 4, 16, 16
    x = jax.random.normal(kx, (N, C, H, W), dtype=jnp.float32)       # "generated"
    conv_w = 0.1 * jax.random.normal(kw, (1, C, KH, KW), dtype=jnp.float32)
    conv_b = 0.1 * jax.random.normal(kb, (1,), dtype=jnp.float32)

    loss = jax.jit(prior_loss)(x, conv_w, conv_b)
    loss = jax.block_until_ready(loss)

    ref = _reference(x, conv_w, conv_b)
    assert jnp.allclose(loss, ref, rtol=1e-5, atol=1e-6), (loss, ref)

    print("KERNEL_OK")
</pallas_src>

<mosaic_0001>
module attributes {stable_mosaic.version = 11 : i64} {
  func.func @_prior_loss_kernel(%arg0: i32, %arg1: memref<4x9xf32, #tpu.memory_space<vmem>>, %arg2: memref<2xf32, #tpu.memory_space<smem>>, %arg3: memref<2x256xf32, #tpu.memory_space<vmem>>, %arg4: memref<1x4x256xf32, #tpu.memory_space<vmem>>, %arg5: memref<1x1xf32, #tpu.memory_space<smem>>, %arg6: memref<4x290xf32, #tpu.memory_space<vmem>>) attributes {dimension_semantics = [#tpu.dimension_semantics<arbitrary>], iteration_bounds = array<i64: 2>, scalar_prefetch = 0 : i64, scratch_operands = 1 : i64, tpu.core_type = #tpu.core_type<tc>, window_params = [{pipeline_mode = #tpu.pipeline_mode<synchronous>, transform_indices = @transform_0, window_bounds = array<i64: 4, 9>}, {transform_indices = @transform_1, window_bounds = array<i64: 2>}, {pipeline_mode = #tpu.pipeline_mode<synchronous>, transform_indices = @transform_2, window_bounds = array<i64: 2, 256>}, {transform_indices = @transform_3, window_bounds = array<i64: 1, 4, 256>}, {transform_indices = @transform_4, window_bounds = array<i64: 1, 1>}]} {
    %c0_i32 = arith.constant 0 : i32
    %0 = arith.cmpi eq, %arg0, %c0_i32 : i32
    %1 = arith.extui %0 : i1 to i32
    %c0_i32_0 = arith.constant 0 : i32
    %2 = arith.cmpi ne, %1, %c0_i32_0 : i32
    scf.if %2 {
      %cst_29 = arith.constant 0.000000e+00 : f32
      %c0_30 = arith.constant 0 : index
      %c0_31 = arith.constant 0 : index
      %92 = memref.load %arg5[%c0_30, %c0_31] : memref<1x1xf32, #tpu.memory_space<smem>>
      memref.store %cst_29, %arg5[%c0_30, %c0_31] : memref<1x1xf32, #tpu.memory_space<smem>>
    } else {
    }
    %c0 = arith.constant 0 : index
    %c0_1 = arith.constant 0 : index
    %c0_2 = arith.constant 0 : index
    %3 = vector.load %arg4[%c0, %c0_1, %c0_2] : memref<1x4x256xf32, #tpu.memory_space<vmem>>, vector<1x4x256xf32>
    %4 = vector.shape_cast %3 : vector<1x4x256xf32> to vector<4x256xf32>
    %cst = arith.constant 0.000000e+00 : f32
    %5 = vector.broadcast %cst : f32 to vector<4x17xf32>
    %c0_3 = arith.constant 0 : index
    %c0_4 = arith.constant 0 : index
    %6 = vector.load %arg6[%c0_3, %c0_4] : memref<4x290xf32, #tpu.memory_space<vmem>>, vector<4x17xf32>
    tpu.vector_store %arg6[%c0_3, %c0_4], %5 {strides = array<i32>} : memref<4x290xf32, #tpu.memory_space<vmem>>, vector<4x17xf32>,
    %c0_5 = arith.constant 0 : index
    %c273 = arith.constant 273 : index
    %7 = vector.load %arg6[%c0_5, %c273] : memref<4x290xf32, #tpu.memory_space<vmem>>, vector<4x17xf32>
    tpu.vector_store %arg6[%c0_5, %c273], %5 {strides = array<i32>} : memref<4x290xf32, #tpu.memory_space<vmem>>, vector<4x17xf32>,
    %c0_6 = arith.constant 0 : index
    %c17 = arith.constant 17 : index
    %8 = vector.load %arg6[%c0_6, %c17] : memref<4x290xf32, #tpu.memory_space<vmem>>, vector<4x256xf32>
    tpu.vector_store %arg6[%c0_6, %c17], %4 {strides = array<i32>} : memref<4x290xf32, #tpu.memory_space<vmem>>, vector<4x256xf32>,
    %c0_7 = arith.constant 0 : index
    %c0_8 = arith.constant 0 : index
    %9 = vector.load %arg6[%c0_7, %c0_8] : memref<4x290xf32, #tpu.memory_space<vmem>>, vector<4x290xf32>
    %c0_9 = arith.constant 0 : index
    %c0_10 = arith.constant 0 : index
    %10 = vector.load %arg1[%c0_9, %c0_10] : memref<4x9xf32, #tpu.memory_space<vmem>>, vector<4x9xf32>
    %c0_11 = arith.constant 0 : index
    %11 = memref.load %arg2[%c0_11] : memref<2xf32, #tpu.memory_space<smem>>
    %c1 = arith.constant 1 : index
    %12 = memref.load %arg2[%c1] : memref<2xf32, #tpu.memory_space<smem>>
    %13 = vector.extract_strided_slice %9 {offsets = [0, 0], sizes = [4, 256], strides = [1, 1]} : vector<4x290xf32> to vector<4x256xf32>
    %14 = vector.extract_strided_slice %10 {offsets = [0, 0], sizes = [4, 1], strides = [1, 1]} : vector<4x9xf32> to vector<4x1xf32>
    %15 = vector.broadcast %14 : vector<4x1xf32> to vector<4x256xf32>
    %16 = arith.mulf %15, %13 : vector<4x256xf32>
    %17 = vector.extract_strided_slice %9 {offsets = [0, 16], sizes = [4, 256], strides = [1, 1]} : vector<4x290xf32> to vector<4x256xf32>
    %18 = vector.extract_strided_slice %10 {offsets = [0, 3], sizes = [4, 1], strides = [1, 1]} : vector<4x9xf32> to vector<4x1xf32>
    %19 = vector.broadcast %18 : vector<4x1xf32> to vector<4x256xf32>
    %20 = arith.mulf %19, %17 : vector<4x256xf32>
    %21 = arith.addf %16, %20 : vector<4x256xf32>
    %22 = vector.extract_strided_slice %9 {offsets = [0, 32], sizes = [4, 256], strides = [1, 1]} : vector<4x290xf32> to vector<4x256xf32>
    %23 = vector.extract_strided_slice %10 {offsets = [0, 6], sizes = [4, 1], strides = [1, 1]} : vector<4x9xf32> to vector<4x1xf32>
    %24 = vector.broadcast %23 : vector<4x1xf32> to vector<4x256xf32>
    %25 = arith.mulf %24, %22 : vector<4x256xf32>
    %26 = arith.addf %21, %25 : vector<4x256xf32>
    %cst_12 = arith.constant dense<0.000000e+00> : vector<256xf32>
    %27 = vector.multi_reduction <add>, %26, %cst_12 [0] : vector<4x256xf32> to vector<256xf32>
    %28 = vector.shape_cast %27 : vector<256xf32> to vector<1x256xf32>
    %29 = vector.extract_strided_slice %9 {offsets = [0, 1], sizes = [4, 256], strides = [1, 1]} : vector<4x290xf32> to vector<4x256xf32>
    %30 = vector.extract_strided_slice %10 {offsets = [0, 1], sizes = [4, 1], strides = [1, 1]} : vector<4x9xf32> to vector<4x1xf32>
    %31 = vector.broadcast %30 : vector<4x1xf32> to vector<4x256xf32>
    %32 = arith.mulf %31, %29 : vector<4x256xf32>
    %33 = vector.extract_strided_slice %9 {offsets = [0, 17], sizes = [4, 256], strides = [1, 1]} : vector<4x290xf32> to vector<4x256xf32>
    %34 = vector.extract_strided_slice %10 {offsets = [0, 4], sizes = [4, 1], strides = [1, 1]} : vector<4x9xf32> to vector<4x1xf32>
    %35 = vector.broadcast %34 : vector<4x1xf32> to vector<4x256xf32>
    %36 = arith.mulf %35, %33 : vector<4x256xf32>
    %37 = arith.addf %32, %36 : vector<4x256xf32>
    %38 = vector.extract_strided_slice %9 {offsets = [0, 33], sizes = [4, 256], strides = [1, 1]} : vector<4x290xf32> to vector<4x256xf32>
    %39 = vector.extract_strided_slice %10 {offsets = [0, 7], sizes = [4, 1], strides = [1, 1]} : vector<4x9xf32> to vector<4x1xf32>
    %40 = vector.broadcast %39 : vector<4x1xf32> to vector<4x256xf32>
    %41 = arith.mulf %40, %38 : vector<4x256xf32>
    %42 = arith.addf %37, %41 : vector<4x256xf32>
    %cst_13 = arith.constant dense<0.000000e+00> : vector<256xf32>
    %43 = vector.multi_reduction <add>, %42, %cst_13 [0] : vector<4x256xf32> to vector<256xf32>
    %44 = vector.shape_cast %43 : vector<256xf32> to vector<1x256xf32>
    %45 = vector.extract_strided_slice %9 {offsets = [0, 2], sizes = [4, 256], strides = [1, 1]} : vector<4x290xf32> to vector<4x256xf32>
    %46 = vector.extract_strided_slice %10 {offsets = [0, 2], sizes = [4, 1], strides = [1, 1]} : vector<4x9xf32> to vector<4x1xf32>
    %47 = vector.broadcast %46 : vector<4x1xf32> to vector<4x256xf32>
    %48 = arith.mulf %47, %45 : vector<4x256xf32>
    %49 = vector.extract_strided_slice %9 {offsets = [0, 18], sizes = [4, 256], strides = [1, 1]} : vector<4x290xf32> to vector<4x256xf32>
    %50 = vector.extract_strided_slice %10 {offsets = [0, 5], sizes = [4, 1], strides = [1, 1]} : vector<4x9xf32> to vector<4x1xf32>
    %51 = vector.broadcast %50 : vector<4x1xf32> to vector<4x256xf32>
    %52 = arith.mulf %51, %49 : vector<4x256xf32>
    %53 = arith.addf %48, %52 : vector<4x256xf32>
    %54 = vector.extract_strided_slice %9 {offsets = [0, 34], sizes = [4, 256], strides = [1, 1]} : vector<4x290xf32> to vector<4x256xf32>
    %55 = vector.extract_strided_slice %10 {offsets = [0, 8], sizes = [4, 1], strides = [1, 1]} : vector<4x9xf32> to vector<4x1xf32>
    %56 = vector.broadcast %55 : vector<4x1xf32> to vector<4x256xf32>
    %57 = arith.mulf %56, %54 : vector<4x256xf32>
    %58 = arith.addf %53, %57 : vector<4x256xf32>
    %cst_14 = arith.constant dense<0.000000e+00> : vector<256xf32>
    %59 = vector.multi_reduction <add>, %58, %cst_14 [0] : vector<4x256xf32> to vector<256xf32>
    %60 = vector.shape_cast %59 : vector<256xf32> to vector<1x256xf32>
    %c0_15 = arith.constant 0 : index
    %c0_16 = arith.constant 0 : index
    %61 = vector.load %arg3[%c0_15, %c0_16] : memref<2x256xf32, #tpu.memory_space<vmem>>, vector<1x256xf32>
    %c1_17 = arith.constant 1 : index
    %c0_18 = arith.constant 0 : index
    %62 = vector.load %arg3[%c1_17, %c0_18] : memref<2x256xf32, #tpu.memory_space<vmem>>, vector<1x256xf32>
    %63 = arith.mulf %61, %28 : vector<1x256xf32>
    %64 = arith.addf %44, %63 : vector<1x256xf32>
    %65 = arith.mulf %62, %60 : vector<1x256xf32>
    %66 = arith.addf %64, %65 : vector<1x256xf32>
    %67 = vector.broadcast %11 : f32 to vector<1x256xf32>
    %68 = arith.addf %66, %67 : vector<1x256xf32>
    %cst_19 = arith.constant 0.000000e+00 : f32
    %69 = vector.broadcast %cst_19 : f32 to vector<1x256xf32>
    %70 = arith.subf %69, %68 : vector<1x256xf32>
    %cst_20 = arith.constant 0.000000e+00 : f32
    %71 = vector.broadcast %cst_20 : f32 to vector<1x256xf32>
    %72 = arith.maximumf %70, %71 : vector<1x256xf32>
    %73 = arith.subf %70, %72 : vector<1x256xf32>
    %74 = math.exp %73 : vector<1x256xf32>
    %cst_21 = arith.constant 0.000000e+00 : f32
    %75 = vector.broadcast %cst_21 : f32 to vector<1x256xf32>
    %76 = arith.subf %75, %72 : vector<1x256xf32>
    %77 = math.exp %76 : vector<1x256xf32>
    %78 = arith.addf %74, %77 : vector<1x256xf32>
    %79 = math.log %78 : vector<1x256xf32>
    %80 = arith.addf %72, %79 : vector<1x256xf32>
    %c0_22 = arith.constant 0 : index
    %c0_23 = arith.constant 0 : index
    %81 = memref.load %arg5[%c0_22, %c0_23] : memref<1x1xf32, #tpu.memory_space<smem>>
    %82 = vector.shape_cast %80 : vector<1x256xf32> to vector<1x1x256xf32>
    %cst_24 = arith.constant dense<0.000000e+00> : vector<1xf32>
    %83 = vector.multi_reduction <add>, %82, %cst_24 [1, 2] : vector<1x1x256xf32> to vector<1xf32>
    %84 = vector.shape_cast %83 : vector<1xf32> to vector<1x1x1xf32>
    %85 = vector.extract %84[0, 0, 0] : f32 from vector<1x1x1xf32>
    %cst_25 = arith.constant 0.000000e+00 : f32
    %86 = arith.subf %cst_25, %85 : f32
    %87 = arith.addf %81, %86 : f32
    %c0_26 = arith.constant 0 : index
    %c0_27 = arith.constant 0 : index
    %88 = memref.load %arg5[%c0_26, %c0_27] : memref<1x1xf32, #tpu.memory_space<smem>>
    memref.store %87, %arg5[%c0_26, %c0_27] : memref<1x1xf32, #tpu.memory_space<smem>>
    %c1_i32 = arith.constant 1 : i32
    %89 = arith.cmpi eq, %arg0, %c1_i32 : i32
    %90 = arith.extui %89 : i1 to i32
    %c0_i32_28 = arith.constant 0 : i32
    %91 = arith.cmpi ne, %90, %c0_i32_28 : i32
    scf.if %91 {
      %c0_29 = arith.constant 0 : index
      %c0_30 = arith.constant 0 : index
      %92 = memref.load %arg5[%c0_29, %c0_30] : memref<1x1xf32, #tpu.memory_space<smem>>
      %93 = arith.mulf %92, %12 : f32
      %c0_31 = arith.constant 0 : index
      %c0_32 = arith.constant 0 : index
      %94 = memref.load %arg5[%c0_31, %c0_32] : memref<1x1xf32, #tpu.memory_space<smem>>
      memref.store %93, %arg5[%c0_31, %c0_32] : memref<1x1xf32, #tpu.memory_space<smem>>
    } else {
    }
    return
  }
  func.func @transform_0(%arg0: i32) -> (i32, i32) {
    %c0_i32 = arith.constant 0 : i32
    %c0_i32_0 = arith.constant 0 : i32
    %c0_i32_1 = arith.constant 0 : i32
    return %c0_i32, %c0_i32_0 : i32, i32
  }
  func.func @transform_1(%arg0: i32) -> i32 {
    %c0_i32 = arith.constant 0 : i32
    %c0_i32_0 = arith.constant 0 : i32
    return %c0_i32 : i32
  }
  func.func @transform_2(%arg0: i32) -> (i32, i32) {
    %c0_i32 = arith.constant 0 : i32
    %c0_i32_0 = arith.constant 0 : i32
    %c0_i32_1 = arith.constant 0 : i32
    return %c0_i32, %c0_i32_0 : i32, i32
  }
  func.func @transform_3(%arg0: i32) -> (i32, i32, i32) {
    %c0_i32 = arith.constant 0 : i32
    %c0_i32_0 = arith.constant 0 : i32
    %c0_i32_1 = arith.constant 0 : i32
    return %arg0, %c0_i32, %c0_i32_0 : i32, i32, i32
  }
  func.func @transform_4(%arg0: i32) -> (i32, i32) {
    %c0_i32 = arith.constant 0 : i32
    %c0_i32_0 = arith.constant 0 : i32
    %c0_i32_1 = arith.constant 0 : i32
    return %c0_i32, %c0_i32_0 : i32, i32
  }
}

</mosaic_0001>

<bundles_post_ra>
// kernel: prior_loss.1
= control target key start
LH: loop header
LB: loop body
LE: loop exit
PB: predicated region body
PF: predicated region fallthrough
CT: control target
= control target key end

     0   :  { %9 = vsyncpa [#allocation5], 0  ;;  %s927_s0 = inlined_call_operand.vmem [shape: f32[4,9], index: 0, kind: input, shape index: {}]   ;;  %s928_s1 = inlined_call_operand.vmem [shape: f32[2], index: 1, kind: input, shape index: {}]   ;;  %s929_s2 = inlined_call_operand.vmem [shape: f32[2,256], index: 2, kind: input, shape index: {}]   ;;  %s930_s3 = inlined_call_operand.vmem [shape: f32[2,4,256], index: 3, kind: input, shape index: {}]   ;;  %s931_s4 = inlined_call_operand.hbm [shape: f32[1,1], index: 4, kind: output, shape index: {}]  }
   0x1   :  { %10 = vsyncpa [#allocation4], 0  ;;  %s805_s15 = smov 0  }
   0x2 LB: > { %s811_s16 = sadd.s32 4294967295, %s756_s15   ;;  %p621_p0 = scmp.ge.s32.totalorder %s756_s15, 1  ;;  %s756_s15 = sphi %s805_s15, %s16_s15  }
   0x3   : > { %p131_p1 = scmp.lt.s32.totalorder %s756_s15, 3  ;;  %s146_s19 = sshll.u32 %s928_s1, 4  ;;  %s147_s19 = int_to_ptr.vmem [resolvable:$true] %s146_s19 }
   0x4   : > { %p655_p3 = scmp.eq.s32.totalorder %s811_s16, 0  ;;  %s758_s20 = smov [#allocation3]  }
   0x5   : > { %p132_p2 = pnand %p621_p0, %p131_p1 }
   0x7   : > { %p651_p4 = pneg %p132_p2  ;;  %170 = sbr.rel (%p132_p2) target bundleno = 598 (0x256), region = 36 }
   0x9   : > { %p652_p5 = pnand %p655_p3, %p651_p4 }
   0xb   : > { %654 = dma.vmem_to_smem (!%p652_p5), %s147_s19, 16, %s758_s20, [#allocation5]  }
   0xc   : > { %747 = dma.done.wait (%p655_p3), [#allocation5], 16  }
   0xd   : > { %749 = vsyncadd (%p655_p3), [#allocation5], 4294967280 }
   0xe   : > { %177 = sfence }
   0xf   : > { %p193_p6 = scmp.lt.s32.totalorder %s811_s16, 1  ;;  %v829_v0 = vld [vmem:[%s927_s0] sm:$0xf]  ;;  %vm205_vm0 = vcmask 134144   ;;  %v759_v1 = vmov 0   ;;  %vm207_vm1 = vcmask 273544  }
  0x10   : > { %691 = vset.pattern.permute.xlu1 %v759_v1  ;;  %v760_v2 = vmov 0.0   ;;  %s761_s28 = smov 17   ;;  %v762_v4 = vmov 6   ;;  %v763_v5 = vmov 2   ;;  %v764_v6 = vmov 3   ;;  %s769_s29 = smov 112  }
  0x11   : > { %s194_s23 = scalar_select %p193_p6, %s811_s16, 1  ;;  %229 = vperm.xlu1 %691, %v829_v0   ;;  %206 = vst.msk [vmem:[#allocation2] sm:$0xf] %vm205_vm0, %v760_v2  ;;  %693 = vset.pattern.permute.xlu0 %v762_v4  ;;  %v765_v7 = vmov 4   ;;  %v766_v8 = vmov 8   ;;  %v767_v9 = vmov 5  }
  0x12   : > { %208 = vst.msk [vmem:[#allocation2 + $0x8] sm:$0xf] %vm207_vm1, %v760_v2  ;;  %692 = vset.pattern.permute.xlu2 %v764_v6  ;;  %v768_v10 = vmov 1   ;;  %vm217_vm2 = vcmask 1043592   ;;  %vm218_vm3 = vcmask 1047556   ;;  %vm213_vm4 = vcmask 138240  }
  0x13   : > { %s636_s24 = sshll.u32 %s194_s23, 3  ;;  %241 = vperm.xlu2 %692, %v829_v0   ;;  %vm219_vm5 = vmor %vm218_vm3, %vm217_vm2  ;;  %s770_s30 = smov 96   ;;  %v775_v37 = vmov 7   ;;  %vm257_vm6 = vcmask 916480   ;;  %vm282_vm7 = vcmask 785408   ;;  %vm291_vm8 = vcmask 1043456  }
  0x14   : > { %s197_s27 = scalar_lea.vmem %s930_s3, %s636_s24  ;;  %s771_s5 = smov 127   ;;  %vm486_vm9 = vcmask 1040384   ;;  %vm432_vm10 = vcmask 900096   ;;  %vm409_vm11 = vcmask 1031168   ;;  %vm457_vm12 = vcmask 769024  }
  0x15   : > { %v204_v3 = vld [vmem:[%s197_s27] sm:$0xff]  ;;  %s772_s6 = smov 111   ;;  %s773_s7 = smov 126   ;;  %vm345_vm13 = vcmask 908288   ;;  %vm322_vm14 = vcmask 1039360   ;;  %vm370_vm15 = vcmask 777216  }
  0x16   : > { %210 = vrot.lane.b32.xlu0 %v204_v3, %s761_s28  ;;  %s774_s8 = smov 95   ;;  %s776_s9 = smov 110  }
  0x17   : > { %s777_s10 = smov 94   ;;  %s225_s13 = sld [smem:[#allocation3]] }
  0x18   : > { %s778_s18 = smov 0.0   ;;  %s629_s20 = sld [smem:[#allocation3 + $0x1]] }
  0x19   : > { %694 = vset.pattern.permute.xlu1 %v763_v5  ;;  %644 = sst [smem:[#allocation6]] (%p655_p3), %s778_s18  ;;  %s567_s25 = sshll.u32 %s931_s4, 4  ;;  %s568_s25 = int_to_ptr.hbm [resolvable:$true] %s567_s25 }
  0x1a   : > { %394 = vperm.xlu1 %694, %v829_v0   ;;  %s537_s19 = sld [smem:[#allocation6]]  ;;  %p658_p7 = scmp.eq.s32.totalorder %s811_s16, 1 }
  0x1b   : > { %695 = vset.pattern.permute.xlu2 %v767_v9  ;;  %s779_s28 = smov [#allocation6]  }
  0x1c   : > { %417 = vperm.xlu2 %695, %v829_v0  }
  0x1e   : > { %267 = vperm.xlu0 %693, %v829_v0  }
  0x22   : > { %698 = vset.pattern.permute.xlu1 %v765_v7 }
  0x23   : > { %330 = vperm.xlu1 %698, %v829_v0  }
  0x26   : > { %696 = vset.pattern.permute.xlu0 %v766_v8 }
  0x27   : > { %442 = vperm.xlu0 %696, %v829_v0  }
  0x2f   : > { %697 = vset.pattern.permute.xlu0 %v768_v10 }
  0x30   : > { %307 = vperm.xlu0 %697, %v829_v0  }
  0x38   : > { %699 = vset.pattern.permute.xlu0 %v775_v37 }
  0x6d   : > { %v242_v46 = vpop.permute.xlu2 %241 }
  0x76   : > { %v863_v47 = vpop.permute.xlu2 %417 }
  0x83   : > { %v230_v16 = vpop.permute.xlu1 %229 }
  0x88   : > { %v211_v11 = vpop.permute.xlu0 %210 }
  0x89   : > { %v212_v12 = vrot.slane %v211_v11, 4 }
  0x8b   : > { %v214_v13 = vsel %vm213_vm4, %v212_v12, %v211_v11  ;;  %221 = vst.msk [vmem:[#allocation2 + $0x8] sm:$0xf] %vm205_vm0, %v212_v12 }
  0x8c   : > { %220 = vst.msk [vmem:[#allocation2] sm:$0xff] %vm219_vm5, %v214_v13  ;;  %v865_v49 = vpop.permute.xlu1 %394 }
  0x90   : > { %v268_v48 = vpop.permute.xlu0 %267 }
  0x92   : > { %v223_v14 = vld [vmem:[#allocation2 + $0x8] sm:$0xf] }
  0x93   : > { %v846_v15 = vld [vmem:[#allocation2] sm:$0xff]  ;;  %247 = vst [vmem:[#allocation1 + $0x10] ss:$2 sm:$0xff] %v223_v14 }
  0x94   : > { %233 = vst [vmem:[#allocation1] ss:$2 sm:$0xff] %v846_v15 }
  0x95   : > { %v869_v52 = vpop.permute.xlu1 %330 }
  0x99   : > { %v867_v51 = vpop.permute.xlu0 %442 }
  0x9a   : > { %v250_v17 = vld.sshfl [vmem:[#allocation1 + $0x10] sm:$0xff pattern:$0x75316420] }
  0x9b   : > { %v234_v18 = vld.sshfl [vmem:[#allocation1] sm:$0xff pattern:$0x75316420]  ;;  %v235_v19 = vld.sshfl [vmem:[#allocation1 + $0x8] sm:$0xff pattern:$0x75316420]  ;;  %255 = vrot.lane.b32.xlu1 %v250_v17, %s769_s29 }
  0x9c   : > { %v849_v20 = vmul.f32 %v234_v18, %v230_v16  ;;  %v851_v21 = vmul.f32 %v235_v19, %v230_v16  ;;  %245 = vst [vmem:[#allocation1] ss:$2 sm:$0xff] %v846_v15 }
  0x9d   : > { %272 = vst [vmem:[#allocation1 + $0x10] ss:$2 sm:$0xff] %v223_v14 }
  0xa2   : > { %v873_v54 = vpop.permute.xlu0 %307 }
  0xa3   : > { %v249_v22 = vld.sshfl [vmem:[#allocation1 + $0x8] sm:$0xff pattern:$0x75316420]  ;;  %v248_v23 = vld.sshfl [vmem:[#allocation1] sm:$0xff pattern:$0x75316420] }
  0xa4   : > { %v275_v24 = vld.sshfl [vmem:[#allocation1 + $0x10] sm:$0xff pattern:$0x75316420]  ;;  %253 = vrot.lane.b32.xlu0 %v249_v22, %s769_s29  ;;  %251 = vrot.lane.b32.xlu2 %v248_v23, %s769_s29  ;;  %270 = vst [vmem:[#allocation1] ss:$2 sm:$0xff] %v846_v15 }
  0xa5   : > { %280 = vrot.lane.b32.xlu1 %v275_v24, %s770_s30  ;;  %312 = vst [vmem:[#allocation1 + $0x10] ss:$2 sm:$0xff] %v223_v14 }
  0xab   : > { %v274_v25 = vld.sshfl [vmem:[#allocation1 + $0x8] sm:$0xff pattern:$0x75316420]  ;;  %v273_v26 = vld.sshfl [vmem:[#allocation1] sm:$0xff pattern:$0x75316420] }
  0xac   : > { %v315_v27 = vld.sshfl [vmem:[#allocation1 + $0x10] sm:$0xff pattern:$0x75316420]  ;;  %278 = vrot.lane.b32.xlu0 %v274_v25, %s770_s30  ;;  %310 = vst [vmem:[#allocation1] ss:$2 sm:$0xff] %v846_v15 }
  0xad   : > { %335 = vst [vmem:[#allocation1 + $0x10] ss:$2 sm:$0xff] %v223_v14  ;;  %320 = vrot.lane.b32.xlu2 %v315_v27, %s771_s5  ;;  %276 = vrot.lane.b32.xlu1 %v273_v26, %s770_s30 }
  0xb3   : > { %v314_v28 = vld.sshfl [vmem:[#allocation1 + $0x8] sm:$0xff pattern:$0x75316420]  ;;  %v313_v29 = vld.sshfl [vmem:[#allocation1] sm:$0xff pattern:$0x75316420] }
  0xb4   : > { %v338_v30 = vld.sshfl [vmem:[#allocation1 + $0x10] sm:$0xff pattern:$0x75316420]  ;;  %333 = vst [vmem:[#allocation1] ss:$2 sm:$0xff] %v846_v15 }
  0xb5   : > { %360 = vst [vmem:[#allocation1 + $0x10] ss:$2 sm:$0xff] %v223_v14  ;;  %343 = vrot.lane.b32.xlu2 %v338_v30, %s772_s6  ;;  %318 = vrot.lane.b32.xlu1 %v314_v28, %s771_s5 }
  0xbb   : > { %v337_v31 = vld.sshfl [vmem:[#allocation1 + $0x8] sm:$0xff pattern:$0x75316420]  ;;  %v336_v32 = vld.sshfl [vmem:[#allocation1] sm:$0xff pattern:$0x75316420] }
  0xbc   : > { %v363_v33 = vld.sshfl [vmem:[#allocation1 + $0x10] sm:$0xff pattern:$0x75316420]  ;;  %339 = vrot.lane.b32.xlu0 %v336_v32, %s772_s6  ;;  %358 = vst [vmem:[#allocation1] ss:$2 sm:$0xff] %v846_v15 }
  0xbd   : > { %399 = vst [vmem:[#allocation1 + $0x10] ss:$2 sm:$0xff] %v223_v14  ;;  %316 = vrot.lane.b32.xlu2 %v313_v29, %s771_s5  ;;  %341 = vrot.lane.b32.xlu1 %v337_v31, %s772_s6 }
  0xc3   : > { %v361_v34 = vld.sshfl [vmem:[#allocation1] sm:$0xff pattern:$0x75316420]  ;;  %v362_v35 = vld.sshfl [vmem:[#allocation1 + $0x8] sm:$0xff pattern:$0x75316420] }
  0xc4   : > { %v402_v36 = vld.sshfl [vmem:[#allocation1 + $0x10] sm:$0xff pattern:$0x75316420]  ;;  %397 = vst [vmem:[#allocation1] ss:$2 sm:$0xff] %v846_v15 }
  0xc5   : > { %422 = vst [vmem:[#allocation1 + $0x10] ss:$2 sm:$0xff] %v223_v14  ;;  %407 = vrot.lane.b32.xlu0 %v402_v36, %s773_s7  ;;  %364 = vrot.lane.b32.xlu2 %v361_v34, %s774_s8 }
  0xcb   : > { %v400_v38 = vld.sshfl [vmem:[#allocation1] sm:$0xff pattern:$0x75316420]  ;;  %v401_v39 = vld.sshfl [vmem:[#allocation1 + $0x8] sm:$0xff pattern:$0x75316420] }
  0xcc   : > { %v425_v40 = vld.sshfl [vmem:[#allocation1 + $0x10] sm:$0xff pattern:$0x75316420]  ;;  %420 = vst [vmem:[#allocation1] ss:$2 sm:$0xff] %v846_v15 }
  0xcd   : > { %447 = vst [vmem:[#allocation1 + $0x10] ss:$2 sm:$0xff] %v223_v14  ;;  %430 = vrot.lane.b32.xlu2 %v425_v40, %s776_s9 }
  0xd3   : > { %v424_v41 = vld.sshfl [vmem:[#allocation1 + $0x8] sm:$0xff pattern:$0x75316420]  ;;  %v423_v42 = vld.sshfl [vmem:[#allocation1] sm:$0xff pattern:$0x75316420] }
  0xd4   : > { %428 = vrot.lane.b32.xlu1 %v424_v41, %s776_s9  ;;  %426 = vrot.lane.b32.xlu0 %v423_v42, %s776_s9  ;;  %445 = vst [vmem:[#allocation1] ss:$2 sm:$0xff] %v846_v15  ;;  %v450_v45 = vld.sshfl [vmem:[#allocation1 + $0x10] sm:$0xff pattern:$0x75316420] }
  0xd5   : > { %405 = vrot.lane.b32.xlu2 %v401_v39, %s773_s7 }
  0xdb   : > { %v449_v43 = vld.sshfl [vmem:[#allocation1 + $0x8] sm:$0xff pattern:$0x75316420]  ;;  %v448_v44 = vld.sshfl [vmem:[#allocation1] sm:$0xff pattern:$0x75316420] }
  0xdc   : > { %453 = vrot.lane.b32.xlu1 %v449_v43, %s777_s10  ;;  %355 = vperm.xlu0 %699, %v829_v0  }
  0xdd   : > { %403 = vrot.lane.b32.xlu2 %v400_v38, %s773_s7 }
  0xe4   : > { %451 = vrot.lane.b32.xlu1 %v448_v44, %s777_s10  ;;  %700 = vset.pattern.permute.xlu0 %v766_v8 }
  0xe5   : > { %455 = vrot.lane.b32.xlu2 %v450_v45, %s777_s10 }
  0xec   : > { %366 = vrot.lane.b32.xlu1 %v362_v35, %s774_s8 }
  0xed   : > { %368 = vrot.lane.b32.xlu2 %v363_v33, %s774_s8 }
  0xfe   : > { %v252_v50 = vpop.permute.xlu2 %251 }
 0x107   : > { %v871_v53 = vpop.permute.xlu2 %320 }
 0x10d   : > { %v256_v55 = vpop.permute.xlu1 %255 }
 0x10f   : > { %v875_v56 = vpop.permute.xlu2 %343 }
 0x116   : > { %v254_v57 = vpop.permute.xlu0 %253 }
 0x117   : > { %v281_v58 = vpop.permute.xlu1 %280  ;;  %v258_v59 = vsel %vm257_vm6, %v252_v50, %v254_v57  ;;  %v259_v61 = vsel %vm257_vm6, %v254_v57, %v256_v55  ;;  %v878_v63 = vpop.permute.xlu2 %316 }
 0x118   : > { %v262_v60 = vmul.f32 %v258_v59, %v242_v46  ;;  %v263_v0 = vmul.f32 %v259_v61, %v242_v46 }
 0x11a   : > { %v264_v62 = vadd.f32 %v262_v60, %v849_v20  ;;  %v265_v4 = vadd.f32 %v263_v0, %v851_v21 }
 0x11e   : > { %v279_v1 = vpop.permute.xlu0 %278 }
 0x11f   : > { %v277_v2 = vpop.permute.xlu1 %276  ;;  %v284_v3 = vsel %vm282_vm7, %v279_v1, %v281_v58  ;;  %v882_v11 = vpop.permute.xlu2 %364 }
 0x120   : > { %v283_v5 = vsel %vm282_vm7, %v277_v2, %v279_v1  ;;  %v288_v6 = vmul.f32 %v284_v3, %v268_v48 }
 0x121   : > { %v287_v7 = vmul.f32 %v283_v5, %v268_v48 }
 0x122   : > { %v290_v8 = vadd.f32 %v288_v6, %v265_v4 }
 0x123   : > { %v289_v9 = vadd.f32 %v287_v7, %v264_v62 }
 0x124   : > { %v299_v10 = vsel %vm291_vm8, %v290_v8, 0.0 }
 0x125   : > { %v292_v12 = vsel %vm291_vm8, %v289_v9, 0.0  ;;  %v300_v13 = vrot.slane %v299_v10, 4 }
 0x126   : > { %v293_v14 = vrot.slane %v292_v12, 4 }
 0x127   : > { %v301_v15 = vadd.f32 %v300_v13, %v299_v10  ;;  %v431_v24 = vpop.permute.xlu2 %430  ;;  %v319_v28 = vpop.permute.xlu1 %318 }
 0x128   : > { %v294_v16 = vadd.f32 %v293_v14, %v292_v12  ;;  %v324_v5 = vsel %vm322_vm14, %v319_v28, %v871_v53 }
 0x129   : > { %v302_v17 = vrot.slane %v301_v15, 2 }
 0x12a   : > { %v295_v18 = vrot.slane %v294_v16, 2 }
 0x12b   : > { %v303_v19 = vadd.f32 %v302_v17, %v301_v15 }
 0x12c   : > { %v296_v20 = vadd.f32 %v295_v18, %v294_v16 }
 0x12d   : > { %v304_v21 = vrot.slane %v303_v19, 1 }
 0x12e   : > { %v297_v22 = vrot.slane %v296_v20, 1  ;;  %v340_v30 = vpop.permute.xlu0 %339 }
 0x12f   : > { %v305_v23 = vadd.f32 %v304_v21, %v303_v19  ;;  %v406_v29 = vpop.permute.xlu2 %405  ;;  %v342_v31 = vpop.permute.xlu1 %341 }
 0x130   : > { %v298_v25 = vadd.f32 %v297_v22, %v296_v20  ;;  %v346_v62 = vsel %vm345_vm13, %v340_v30, %v342_v31  ;;  %v347_v2 = vsel %vm345_vm13, %v342_v31, %v875_v56  ;;  %v328_v56 = vmul.f32 %v324_v5, %v873_v54 }
 0x131   : > { %v485_v26 = vrot.slane %v305_v23, 7  ;;  %v350_v6 = vmul.f32 %v346_v62, %v869_v52 }
 0x133   : > { %v886_v27 = vsel %vm486_vm9, %v298_v25, %v485_v26 }
 0x137   : > { %v404_v32 = vpop.permute.xlu2 %403  ;;  %v408_v33 = vpop.permute.xlu0 %407 }
 0x138   : > { %v411_v36 = vsel %vm409_vm11, %v406_v29, %v408_v33  ;;  %v410_v48 = vsel %vm409_vm11, %v404_v32, %v406_v29  ;;  %v480_v32 = vld [vmem:[%s929_s2] ss:$2 sm:$0x3] }
 0x139   : > { %v415_v39 = vmul.f32 %v411_v36, %v865_v49  ;;  %v414_v58 = vmul.f32 %v410_v48, %v865_v49  ;;  %v351_v49 = vmul.f32 %v347_v2, %v869_v52 }
 0x13b   : > { %v353_v17 = vadd.f32 %v351_v49, %v328_v56 }
 0x13f   : > { %v456_v38 = vpop.permute.xlu2 %455 }
 0x146   : > { %v429_v34 = vpop.permute.xlu1 %428  ;;  %v427_v40 = vpop.permute.xlu0 %426 }
 0x147   : > { %v434_v35 = vsel %vm432_vm10, %v429_v34, %v431_v24  ;;  %v433_v45 = vsel %vm432_vm10, %v427_v40, %v429_v34  ;;  %v369_v12 = vpop.permute.xlu2 %368 }
 0x148   : > { %v438_v37 = vmul.f32 %v434_v35, %v863_v47  ;;  %v437_v50 = vmul.f32 %v433_v45, %v863_v47  ;;  %v323_v47 = vsel %vm322_vm14, %v878_v63, %v319_v28  ;;  %v630_v35 = vld [vmem:[%s929_s2 + $0x1] ss:$2 sm:$0x3] }
 0x149   : > { %v327_v9 = vmul.f32 %v323_v47, %v873_v54 }
 0x14a   : > { %v440_v43 = vadd.f32 %v438_v37, %v415_v39  ;;  %v439_v0 = vadd.f32 %v437_v50, %v414_v58  ;;  %v489_v39 = vmul.f32 %v886_v27, %v480_v32  ;;  %v510_v58 = vstv %s225_s13 }
 0x14b   : > { %v352_v14 = vadd.f32 %v350_v6, %v327_v9 }
 0x14c   : > { %v491_v45 = vperm.slane %v489_v39, 0 }
 0x14e   : > { %v454_v41 = vpop.permute.xlu1 %453 }
 0x14f   : > { %v459_v42 = vsel %vm457_vm12, %v454_v41, %v456_v38 }
 0x150   : > { %v463_v44 = vmul.f32 %v459_v42, %v867_v51 }
 0x152   : > { %v465_v46 = vadd.f32 %v463_v44, %v440_v43 }
 0x154   : > { %v473_v55 = vsel %vm291_vm8, %v465_v46, 0.0  ;;  %v492_v46 = vperm.slane %v489_v39, 1 }
 0x155   : > { %v474_v57 = vrot.slane %v473_v55, 4 }
 0x156   : > { %v452_v59 = vpop.permute.xlu1 %451 }
 0x157   : > { %v475_v60 = vadd.f32 %v474_v57, %v473_v55  ;;  %v458_v61 = vsel %vm457_vm12, %v452_v59, %v454_v41 }
 0x158   : > { %v462_v1 = vmul.f32 %v458_v61, %v867_v51  ;;  %v356_v51 = vpop.permute.xlu0 %355 }
 0x159   : > { %v476_v3 = vrot.slane %v475_v60, 2 }
 0x15a   : > { %v464_v4 = vadd.f32 %v462_v1, %v439_v0 }
 0x15b   : > { %v477_v7 = vadd.f32 %v476_v3, %v475_v60 }
 0x15c   : > { %v466_v8 = vsel %vm291_vm8, %v464_v4, 0.0 }
 0x15d   : > { %v467_v10 = vrot.slane %v466_v8, 4  ;;  %v478_v16 = vrot.slane %v477_v7, 1 }
 0x15e   : > { %v367_v13 = vpop.permute.xlu1 %366 }
 0x15f   : > { %v468_v63 = vadd.f32 %v467_v10, %v466_v8  ;;  %v371_v53 = vsel %vm370_vm15, %v882_v11, %v367_v13  ;;  %v372_v15 = vsel %vm370_vm15, %v367_v13, %v369_v12  ;;  %v479_v23 = vadd.f32 %v478_v16, %v477_v7 }
 0x160   : > { %v375_v52 = vmul.f32 %v371_v53, %v356_v51  ;;  %v376_v18 = vmul.f32 %v372_v15, %v356_v51 }
 0x161   : > { %v469_v19 = vrot.slane %v468_v63, 2  ;;  %v499_v31 = vrot.slane %v479_v23, 7 }
 0x162   : > { %v377_v20 = vadd.f32 %v375_v52, %v352_v14  ;;  %v378_v21 = vadd.f32 %v376_v18, %v353_v17 }
 0x163   : > { %v470_v22 = vadd.f32 %v469_v19, %v468_v63 }
 0x164   : > { %v379_v24 = vsel %vm291_vm8, %v377_v20, 0.0  ;;  %v386_v54 = vsel %vm291_vm8, %v378_v21, 0.0 }
 0x165   : > { %v471_v25 = vrot.slane %v470_v22, 1  ;;  %v380_v26 = vrot.slane %v379_v24, 4  ;;  %v387_v28 = vrot.slane %v386_v54, 4 }
 0x167   : > { %v472_v29 = vadd.f32 %v471_v25, %v470_v22  ;;  %v381_v30 = vadd.f32 %v380_v26, %v379_v24  ;;  %v388_v11 = vadd.f32 %v387_v28, %v386_v54 }
 0x169   : > { %v382_v33 = vrot.slane %v381_v30, 2  ;;  %v389_v34 = vrot.slane %v388_v11, 2  ;;  %v500_v36 = vsel %vm486_vm9, %v472_v29, %v499_v31 }
 0x16a   : > { %v502_v42 = vmul.f32 %v630_v35, %v500_v36 }
 0x16b   : > { %v383_v37 = vadd.f32 %v382_v33, %v381_v30  ;;  %v390_v38 = vadd.f32 %v389_v34, %v388_v11 }
 0x16c   : > { %v504_v55 = vperm.slane %v502_v42, 0  ;;  %v505_v57 = vperm.slane %v502_v42, 1 }
 0x16d   : > { %v384_v40 = vrot.slane %v383_v37, 1  ;;  %v391_v41 = vrot.slane %v390_v38, 1 }
 0x16f   : > { %v385_v43 = vadd.f32 %v384_v40, %v383_v37  ;;  %v392_v44 = vadd.f32 %v391_v41, %v390_v38 }
 0x171   : > { %v495_v48 = vadd.f32 %v491_v45, %v385_v43  ;;  %v496_v50 = vadd.f32 %v492_v46, %v392_v44 }
 0x173   : > { %v508_v59 = vadd.f32 %v504_v55, %v495_v48  ;;  %v509_v60 = vadd.f32 %v505_v57, %v496_v50 }
 0x175   : > { %v511_v61 = vadd.f32 %v510_v58, %v508_v59  ;;  %v512_v62 = vadd.f32 %v510_v58, %v509_v60 }
 0x177   : > { %v513_v0 = vsub.f32 0.0, %v511_v61  ;;  %v514_v1 = vsub.f32 0.0, %v512_v62 }
 0x179   : > { %v515_v2 = vmax.f32 %v513_v0, 0.0  ;;  %v516_v27 = vmax.f32 %v514_v1, 0.0 }
 0x17b   : > { %v517_v3 = vsub.f32 %v513_v0, %v515_v2  ;;  %v518_v47 = vsub.f32 %v514_v1, %v516_v27  ;;  %v523_v4 = vsub.f32 0.0, %v515_v2  ;;  %v524_v5 = vsub.f32 0.0, %v516_v27 }
 0x17d   : > { %v519_v6 = vmul.f32 1.442695, %v517_v3  ;;  %v521_v49 = vmul.f32 1.442695, %v518_v47  ;;  %v525_v7 = vmul.f32 1.442695, %v523_v4 }
 0x17e   : > { %v527_v8 = vmul.f32 1.442695, %v524_v5 }
 0x17f   : > { %701 = vpow2.f32 %v519_v6 }
 0x180   : > { %703 = vpow2.f32 %v521_v49 }
 0x181   : > { %705 = vpow2.f32 %v525_v7 }
 0x182   : > { %707 = vpow2.f32 %v527_v8 }
 0x185   : > { %v702_v9 = vpop.eup %701 }
 0x186   : > { %v704_v10 = vpop.eup %703 }
 0x187   : > { %v706_v51 = vpop.eup %705 }
 0x188   : > { %v708_v56 = vpop.eup %707  ;;  %v529_v12 = vadd.f32 %v706_v51, %v702_v9 }
 0x189   : > { %v530_v13 = vadd.f32 %v708_v56, %v704_v10 }
 0x18a   : > { %709 = vlog2.f32 %v529_v12 }
 0x18b   : > { %711 = vlog2.f32 %v530_v13 }
 0x190   : > { %v710_v63 = vpop.eup %709 }
 0x191   : > { %v712_v14 = vpop.eup %711  ;;  %v532_v53 = vmul.f32 0.6931472, %v710_v63 }
 0x192   : > { %v534_v15 = vmul.f32 0.6931472, %v712_v14 }
 0x193   : > { %v535_v16 = vadd.f32 %v532_v53, %v515_v2 }
 0x194   : > { %v536_v17 = vadd.f32 %v534_v15, %v516_v27 }
 0x195   : > { %v538_v52 = vsel %vm486_vm9, %v535_v16, 0.0 }
 0x196   : > { %v539_v18 = vsel %vm486_vm9, %v536_v17, 0.0 }
 0x197   : > { %v540_v19 = vadd.f32 %v539_v18, %v538_v52 }
 0x199   : > { %541 = vadd.xlane.f32.xlu1 %v540_v19 }
 0x20c   : > { %v542_v20 = vpop.xlane.xlu1 %541 }
 0x20d   : > { %v543_v21 = vrot.slane %v542_v20, 4 }
 0x20f   : > { %v544_v22 = vadd.f32 %v543_v21, %v542_v20 }
 0x211   : > { %v545_v23 = vrot.slane %v544_v22, 2 }
 0x213   : > { %v546_v24 = vadd.f32 %v545_v23, %v544_v22 }
 0x215   : > { %v547_v54 = vrot.slane %v546_v24, 1 }
 0x217   : > { %v548_v25 = vadd.f32 %v547_v54, %v546_v24 }
 0x219   : > { %637 = vpush %v548_v25 }
 0x24a   : > { %s638_s21 = spop %637 }
 0x24b   : > { %s550_s22 = ssub.f32 0.0, %s638_s21 }
 0x24d   : > { %s551_s26 = sadd.f32 %s550_s22, %s537_s19 }
 0x24f   : > { %553 = sst [smem:[#allocation6]] %s551_s26  ;;  %s559_s27 = smul.f32 %s629_s20, %s551_s26 }
 0x251   : > { %646 = sst [smem:[#allocation6]] (%p658_p7), %s559_s27 }
 0x252   : > { %648 = dma.smem_to_hbm (%p658_p7), %s779_s28, 16, %s568_s25, [#allocation4]  }
 0x253   : > { %751 = dma.done.wait (%p658_p7), [#allocation4], 16  }
 0x254   : > { %753 = vsyncadd (%p658_p7), [#allocation4], 4294967280 }
 0x255   : > { %576 = sfence }
 0x256 PF: > { %s16_s15 = sadd.s32 1, %s756_s15  }
 0x257   : > { %p13_p8 = scmp.ge.s32.totalorder %s16_s15, 4  }
 0x259   :  { %15 = sbr.rel (!%p13_p8) target bundleno = 2 (0x2), region = 87 }
 0x25e   :  { %582 = vsyncpa [#allocation4], 1 }
 0x25f   :  { %584 = vsyncpa [#allocation4 + $0x1], 1 }
 0x260   :  { %585 = vsyncpa [#allocation5], 1 }
 0x261   :  { %587 = vsyncpa [#allocation5 + $0x1], 1 }

</bundles_post_ra>
